<compile_context>
chip_gen: v7x
topology: tpu7x:2x2x1
jax: 0.10.0
libtpu: 0.0.40
codegen_flags: <defaults>
</compile_context>

<pallas_src>
import functools

import jax
import jax.numpy as jnp
from jax.experimental import pallas as pl
from jax.experimental.pallas import tpu as pltpu

N = 23          # hard-coded node count in Sub_Actor.__init__ (n = 23)
LEAK = 0.01     # LeakyReLU negative slope
LANE = 128      # lane-dense width for packed slabs / output

# Architecture (small, consistent with the module's list-of-sizes constructor)
LINEAR1 = [16, 32]      # 1 linear1 layer
GNN1    = [32, 32]      # 1 GNN layer
LINEAR2 = [32, 32, 8]   # 2 linear2 layers (last one: no leakyrelu)
LEN_PARA = len(LINEAR1) + len(LINEAR2) + len(GNN1) - 3   # = 4

IN_F  = LINEAR1[0]      # 16
H1    = LINEAR1[1]      # 32
HG    = GNN1[1]         # 32
H2    = LINEAR2[1]      # 32
OUT_F = LINEAR2[2]      # 8

# Row offsets inside the packed weight slab (all multiples of 8).
R_W1, R_WG, R_W2A, R_W2B = 0, 16, 48, 80
SLAB_ROWS = 112          # 16 + 32 + 32 + 32
AUX_ROWS  = 32           # rows 0..3: biases, rows 8..30: parameter (23, 4)
P_ROW     = 8

B_TILE = 4               # actor instances processed per grid step


def _leaky(x):
    # max(x, 0.01*x) == LeakyReLU(0.01); avoids a compare+select pair.
    return jnp.maximum(x, LEAK * x)


def pack_params(params):
    """Pack all weights / biases / gating parameters into two lane-dense slabs."""
    slab = jnp.zeros((SLAB_ROWS, LANE), jnp.float32)
    slab = slab.at[R_W1:R_W1 + IN_F, :H1].set(params["w1"].T)              # (16, 32)
    slab = slab.at[R_WG:R_WG + GNN1[0], :HG].set(params["wg"])             # (32, 32)
    slab = slab.at[R_W2A:R_W2A + LINEAR2[0], :H2].set(params["w2a"].T)     # (32, 32)
    slab = slab.at[R_W2B:R_W2B + LINEAR2[1], :OUT_F].set(params["w2b"].T)  # (32, 8->128)

    aux = jnp.zeros((AUX_ROWS, LANE), jnp.float32)
    aux = aux.at[0, :H1].set(params["b1"])
    aux = aux.at[1, :HG].set(params["bg"])
    aux = aux.at[2, :H2].set(params["b2a"])
    aux = aux.at[3, :OUT_F].set(params["b2b"])
    # parameter (LEN_PARA, N, 1) -> (N, LEN_PARA) stored at rows 8..30
    aux = aux.at[P_ROW:P_ROW + N, :LEN_PARA].set(params["p"][:, :, 0].T)
    return slab, aux


def sub_actor_kernel(slab_ref, aux_ref, x_ref, A_ref, o_ref):
    # Parameter slabs: constant index_map -> VMEM-resident, no re-DMA per step.
    slab = slab_ref[...]                               # (112, 128)
    aux = aux_ref[...]                                 # (32, 128)

    w1  = slab[R_W1:R_W1 + IN_F, :H1]                  # (16, 32)  already (in, out)
    wg  = slab[R_WG:R_WG + GNN1[0], :HG]               # (32, 32)
    w2a = slab[R_W2A:R_W2A + LINEAR2[0], :H2]          # (32, 32)
    w2b = slab[R_W2B:R_W2B + LINEAR2[1], :]            # (32, 128) zero-padded cols

    # Hoist all bias / gating broadcasts out of the unrolled batch loop.
    b1  = jnp.broadcast_to(aux[0:1, :H1], (N, H1))
    bg  = jnp.broadcast_to(aux[1:2, :HG], (N, HG))
    b2a = jnp.broadcast_to(aux[2:3, :H2], (N, H2))
    b2b = jnp.broadcast_to(aux[3:4, :], (N, LANE))
    p   = aux[P_ROW:P_ROW + N, :LEN_PARA]              # (23, 4)
    p0  = jnp.broadcast_to(p[:, 0:1], (N, H1))
    p1  = jnp.broadcast_to(p[:, 1:2], (N, HG))
    p2  = jnp.broadcast_to(p[:, 2:3], (N, H2))
    p3  = jnp.broadcast_to(p[:, 3:4], (N, LANE))

    # Static unrolled loop over the B_TILE instances in this block: every dot
    # is a plain 2-D MXU matmul with f32 accumulation.
    for b in range(x_ref.shape[0]):
        x = x_ref[b]                                   # (23, 16)
        A = A_ref[b]                                   # (23, 23)

        # linear1[0]: x = LeakyReLU(x @ W1 + b1) * param[0]
        h = jnp.dot(x, w1, preferred_element_type=jnp.float32) + b1
        h = _leaky(h) * p0

        # gnn[0]: x = LeakyReLU(A @ (x @ Wg) + bg) * param[1]
        sup = jnp.dot(h, wg, preferred_element_type=jnp.float32)
        h = jnp.dot(A, sup, preferred_element_type=jnp.float32) + bg
        h = _leaky(h) * p1

        # linear2[0]: leakyrelu applied (i < len_linear2 - 2)
        h = jnp.dot(h, w2a, preferred_element_type=jnp.float32) + b2a
        h = _leaky(h) * p2

        # linear2[1]: last layer, NO leakyrelu, still * param[3]
        # (23, 32) @ (32, 128) -> lane-dense (23, 128); cols 8..127 stay zero.
        h = jnp.dot(h, w2b, preferred_element_type=jnp.float32) + b2b
        h = h * p3

        o_ref[b] = h.astype(o_ref.dtype)


@functools.partial(jax.jit, static_argnames=("block_b",))
def sub_actor_forward(x, A, params, *, block_b=B_TILE):
    """x: (B, 23, 16), A: (B, 23, 23) -> (B, 23, 8)."""
    B = x.shape[0]
    slab, aux = pack_params(params)

    n_blocks = (B + block_b - 1) // block_b
    Bp = n_blocks * block_b
    if Bp != B:                                        # pad batch to a block multiple
        pad = Bp - B
        x = jnp.concatenate([x, jnp.zeros((pad, N, IN_F), x.dtype)], axis=0)
        A = jnp.concatenate([A, jnp.zeros((pad, N, N), A.dtype)], axis=0)

    out = pl.pallas_call(
        sub_actor_kernel,
        out_shape=jax.ShapeDtypeStruct((Bp, N, LANE), jnp.float32),
        grid=(n_blocks,),
        in_specs=[
            pl.BlockSpec((SLAB_ROWS, LANE), lambda i: (0, 0)),      # weights, resident
            pl.BlockSpec((AUX_ROWS, LANE), lambda i: (0, 0)),       # biases+p, resident
            pl.BlockSpec((block_b, N, IN_F), lambda i: (i, 0, 0)),  # x tile
            pl.BlockSpec((block_b, N, N), lambda i: (i, 0, 0)),     # A tile
        ],
        out_specs=pl.BlockSpec((block_b, N, LANE), lambda i: (i, 0, 0)),
        compiler_params=pltpu.CompilerParams(
            dimension_semantics=("parallel",)),
    )(slab, aux, x, A)

    return out[:B, :, :OUT_F]


def sub_actor_reference(x, A, p):
    """Plain-JAX reference of the same forward pass for ONE instance."""
    y = _leaky(x @ p["w1"].T + p["b1"]) * p["p"][0]
    y = _leaky(A @ (y @ p["wg"]) + p["bg"]) * p["p"][1]
    y = _leaky(y @ p["w2a"].T + p["b2a"]) * p["p"][2]
    y = (y @ p["w2b"].T + p["b2b"]) * p["p"][3]
    return y


def init_params(key):
    ks = jax.random.split(key, 10)

    def u(k, shape, scale=0.1):
        return jax.random.uniform(k, shape, jnp.float32, -scale, scale)

    params = {
        # linear1[0]: in=16 -> out=32, PyTorch Linear weight is (out, in)
        "w1":  u(ks[0], (H1, IN_F)),
        "b1":  u(ks[1], (H1,)),
        # gnn[0]: weight (in, out), bias (out,)
        "wg":  u(ks[2], (GNN1[0], GNN1[1])),
        "bg":  u(ks[3], (HG,)),
        # linear2[0]: 32 -> 32
        "w2a": u(ks[4], (H2, LINEAR2[0])),
        "b2a": u(ks[5], (H2,)),
        # linear2[1]: 32 -> 8
        "w2b": u(ks[6], (OUT_F, LINEAR2[1])),
        "b2b": u(ks[7], (OUT_F,)),
        # self.parameter = Parameter(torch.rand((len_para, n, 1))) -> U[0,1)
        "p":   jax.random.uniform(ks[8], (LEN_PARA, N, 1), jnp.float32),
    }
    return params, ks[9]


if __name__ == "__main__":
    key = jax.random.PRNGKey(0)
    params, key = init_params(key)

    kx, kA = jax.random.split(key)
    B = 8
    x = jax.random.uniform(kx, (B, N, IN_F), jnp.float32, -1.0, 1.0)
    # dense "A_shape" adjacency per instance (row-normalized-ish, deterministic)
    A = jax.random.uniform(kA, (B, N, N), jnp.float32, 0.0, 1.0) / N

    out = sub_actor_forward(x, A, params)
    out = jax.block_until_ready(out)

    ref = jax.vmap(lambda xb, Ab: sub_actor_reference(xb, Ab, params))(x, A)
    assert out.shape == (B, N, OUT_F)
    # Tolerance allows for MXU bf16-input / f32-accum rounding vs XLA default.
    assert jnp.allclose(out, ref, atol=2e-3, rtol=2e-3), "mismatch vs JAX reference"

    print("KERNEL_OK")
</pallas_src>

<mosaic_0001>
module attributes {stable_mosaic.version = 11 : i64} {
  func.func @sub_actor_kernel(%arg0: i32, %arg1: memref<112x128xf32, #tpu.memory_space<vmem>>, %arg2: memref<32x128xf32, #tpu.memory_space<vmem>>, %arg3: memref<4x23x16xf32, #tpu.memory_space<vmem>>, %arg4: memref<4x23x23xf32, #tpu.memory_space<vmem>>, %arg5: memref<4x23x128xf32, #tpu.memory_space<vmem>>) attributes {dimension_semantics = [#tpu.dimension_semantics<parallel>], iteration_bounds = array<i64: 2>, scalar_prefetch = 0 : i64, scratch_operands = 0 : i64, tpu.core_type = #tpu.core_type<tc>, window_params = [{pipeline_mode = #tpu.pipeline_mode<synchronous>, transform_indices = @transform_0, window_bounds = array<i64: 112, 128>}, {pipeline_mode = #tpu.pipeline_mode<synchronous>, transform_indices = @transform_1, window_bounds = array<i64: 32, 128>}, {transform_indices = @transform_2, window_bounds = array<i64: 4, 23, 16>}, {transform_indices = @transform_3, window_bounds = array<i64: 4, 23, 23>}, {transform_indices = @transform_4, window_bounds = array<i64: 4, 23, 128>}]} {
    %c0 = arith.constant 0 : index
    %c0_0 = arith.constant 0 : index
    %0 = vector.load %arg1[%c0, %c0_0] : memref<112x128xf32, #tpu.memory_space<vmem>>, vector<112x128xf32>
    %c0_1 = arith.constant 0 : index
    %c0_2 = arith.constant 0 : index
    %1 = vector.load %arg2[%c0_1, %c0_2] : memref<32x128xf32, #tpu.memory_space<vmem>>, vector<32x128xf32>
    %2 = vector.extract_strided_slice %0 {offsets = [0, 0], sizes = [16, 32], strides = [1, 1]} : vector<112x128xf32> to vector<16x32xf32>
    %3 = vector.extract_strided_slice %0 {offsets = [16, 0], sizes = [32, 32], strides = [1, 1]} : vector<112x128xf32> to vector<32x32xf32>
    %4 = vector.extract_strided_slice %0 {offsets = [48, 0], sizes = [32, 32], strides = [1, 1]} : vector<112x128xf32> to vector<32x32xf32>
    %5 = vector.extract_strided_slice %0 {offsets = [80, 0], sizes = [32, 128], strides = [1, 1]} : vector<112x128xf32> to vector<32x128xf32>
    %6 = vector.extract_strided_slice %1 {offsets = [0, 0], sizes = [1, 32], strides = [1, 1]} : vector<32x128xf32> to vector<1x32xf32>
    %7 = vector.shape_cast %6 : vector<1x32xf32> to vector<1x32xf32>
    %8 = vector.broadcast %7 : vector<1x32xf32> to vector<23x32xf32>
    %9 = vector.extract_strided_slice %1 {offsets = [1, 0], sizes = [1, 32], strides = [1, 1]} : vector<32x128xf32> to vector<1x32xf32>
    %10 = vector.shape_cast %9 : vector<1x32xf32> to vector<1x32xf32>
    %11 = vector.broadcast %10 : vector<1x32xf32> to vector<23x32xf32>
    %12 = vector.extract_strided_slice %1 {offsets = [2, 0], sizes = [1, 32], strides = [1, 1]} : vector<32x128xf32> to vector<1x32xf32>
    %13 = vector.shape_cast %12 : vector<1x32xf32> to vector<1x32xf32>
    %14 = vector.broadcast %13 : vector<1x32xf32> to vector<23x32xf32>
    %15 = vector.extract_strided_slice %1 {offsets = [3, 0], sizes = [1, 128], strides = [1, 1]} : vector<32x128xf32> to vector<1x128xf32>
    %16 = vector.shape_cast %15 : vector<1x128xf32> to vector<1x128xf32>
    %17 = vector.broadcast %16 : vector<1x128xf32> to vector<23x128xf32>
    %18 = vector.extract_strided_slice %1 {offsets = [8, 0], sizes = [23, 4], strides = [1, 1]} : vector<32x128xf32> to vector<23x4xf32>
    %19 = vector.extract_strided_slice %18 {offsets = [0, 0], sizes = [23, 1], strides = [1, 1]} : vector<23x4xf32> to vector<23x1xf32>
    %20 = vector.shape_cast %19 : vector<23x1xf32> to vector<23x1xf32>
    %21 = vector.broadcast %20 : vector<23x1xf32> to vector<23x32xf32>
    %22 = vector.extract_strided_slice %18 {offsets = [0, 1], sizes = [23, 1], strides = [1, 1]} : vector<23x4xf32> to vector<23x1xf32>
    %23 = vector.shape_cast %22 : vector<23x1xf32> to vector<23x1xf32>
    %24 = vector.broadcast %23 : vector<23x1xf32> to vector<23x32xf32>
    %25 = vector.extract_strided_slice %18 {offsets = [0, 2], sizes = [23, 1], strides = [1, 1]} : vector<23x4xf32> to vector<23x1xf32>
    %26 = vector.shape_cast %25 : vector<23x1xf32> to vector<23x1xf32>
    %27 = vector.broadcast %26 : vector<23x1xf32> to vector<23x32xf32>
    %28 = vector.extract_strided_slice %18 {offsets = [0, 3], sizes = [23, 1], strides = [1, 1]} : vector<23x4xf32> to vector<23x1xf32>
    %29 = vector.shape_cast %28 : vector<23x1xf32> to vector<23x1xf32>
    %30 = vector.broadcast %29 : vector<23x1xf32> to vector<23x128xf32>
    %c0_3 = arith.constant 0 : index
    %c0_4 = arith.constant 0 : index
    %c0_5 = arith.constant 0 : index
    %31 = vector.load %arg3[%c0_3, %c0_4, %c0_5] : memref<4x23x16xf32, #tpu.memory_space<vmem>>, vector<1x23x16xf32>
    %32 = vector.shape_cast %31 : vector<1x23x16xf32> to vector<23x16xf32>
    %c0_6 = arith.constant 0 : index
    %c0_7 = arith.constant 0 : index
    %c0_8 = arith.constant 0 : index
    %33 = vector.load %arg4[%c0_6, %c0_7, %c0_8] : memref<4x23x23xf32, #tpu.memory_space<vmem>>, vector<1x23x23xf32>
    %34 = vector.shape_cast %33 : vector<1x23x23xf32> to vector<23x23xf32>
    %cst = arith.constant dense<0.000000e+00> : vector<23x32xf32>
    %35 = tpu.matmul %32, %2, %cst {dimension_numbers = #tpu.dot_dimension_numbers<[1], [0], [0], [1], [0, 0, 1, 1], [], []>} : vector<23x16xf32>, vector<16x32xf32>, vector<23x32xf32> -> vector<23x32xf32>
    %36 = arith.addf %35, %8 : vector<23x32xf32>
    %cst_9 = arith.constant 0.00999999977 : f32
    %37 = vector.broadcast %cst_9 : f32 to vector<23x32xf32>
    %38 = arith.mulf %37, %36 : vector<23x32xf32>
    %39 = arith.maximumf %36, %38 : vector<23x32xf32>
    %40 = arith.mulf %39, %21 : vector<23x32xf32>
    %cst_10 = arith.constant dense<0.000000e+00> : vector<23x32xf32>
    %41 = tpu.matmul %40, %3, %cst_10 {dimension_numbers = #tpu.dot_dimension_numbers<[1], [0], [0], [1], [0, 0, 1, 1], [], []>} : vector<23x32xf32>, vector<32x32xf32>, vector<23x32xf32> -> vector<23x32xf32>
    %cst_11 = arith.constant dense<0.000000e+00> : vector<23x32xf32>
    %42 = tpu.matmul %34, %41, %cst_11 {dimension_numbers = #tpu.dot_dimension_numbers<[1], [0], [0], [1], [0, 0, 1, 1], [], []>} : vector<23x23xf32>, vector<23x32xf32>, vector<23x32xf32> -> vector<23x32xf32>
    %43 = arith.addf %42, %11 : vector<23x32xf32>
    %cst_12 = arith.constant 0.00999999977 : f32
    %44 = vector.broadcast %cst_12 : f32 to vector<23x32xf32>
    %45 = arith.mulf %44, %43 : vector<23x32xf32>
    %46 = arith.maximumf %43, %45 : vector<23x32xf32>
    %47 = arith.mulf %46, %24 : vector<23x32xf32>
    %cst_13 = arith.constant dense<0.000000e+00> : vector<23x32xf32>
    %48 = tpu.matmul %47, %4, %cst_13 {dimension_numbers = #tpu.dot_dimension_numbers<[1], [0], [0], [1], [0, 0, 1, 1], [], []>} : vector<23x32xf32>, vector<32x32xf32>, vector<23x32xf32> -> vector<23x32xf32>
    %49 = arith.addf %48, %14 : vector<23x32xf32>
    %cst_14 = arith.constant 0.00999999977 : f32
    %50 = vector.broadcast %cst_14 : f32 to vector<23x32xf32>
    %51 = arith.mulf %50, %49 : vector<23x32xf32>
    %52 = arith.maximumf %49, %51 : vector<23x32xf32>
    %53 = arith.mulf %52, %27 : vector<23x32xf32>
    %cst_15 = arith.constant dense<0.000000e+00> : vector<23x128xf32>
    %54 = tpu.matmul %53, %5, %cst_15 {dimension_numbers = #tpu.dot_dimension_numbers<[1], [0], [0], [1], [0, 0, 1, 1], [], []>} : vector<23x32xf32>, vector<32x128xf32>, vector<23x128xf32> -> vector<23x128xf32>
    %55 = arith.addf %54, %17 : vector<23x128xf32>
    %56 = arith.mulf %55, %30 : vector<23x128xf32>
    %c0_16 = arith.constant 0 : index
    %c0_17 = arith.constant 0 : index
    %c0_18 = arith.constant 0 : index
    %57 = vector.load %arg5[%c0_16, %c0_17, %c0_18] : memref<4x23x128xf32, #tpu.memory_space<vmem>>, vector<1x23x128xf32>
    %58 = vector.shape_cast %57 : vector<1x23x128xf32> to vector<23x128xf32>
    %59 = vector.shape_cast %56 : vector<23x128xf32> to vector<1x23x128xf32>
    tpu.vector_store %arg5[%c0_16, %c0_17, %c0_18], %59 {strides = array<i32>} : memref<4x23x128xf32, #tpu.memory_space<vmem>>, vector<1x23x128xf32>,
    %c1 = arith.constant 1 : index
    %c0_19 = arith.constant 0 : index
    %c0_20 = arith.constant 0 : index
    %60 = vector.load %arg3[%c1, %c0_19, %c0_20] : memref<4x23x16xf32, #tpu.memory_space<vmem>>, vector<1x23x16xf32>
    %61 = vector.shape_cast %60 : vector<1x23x16xf32> to vector<23x16xf32>
    %c1_21 = arith.constant 1 : index
    %c0_22 = arith.constant 0 : index
    %c0_23 = arith.constant 0 : index
    %62 = vector.load %arg4[%c1_21, %c0_22, %c0_23] : memref<4x23x23xf32, #tpu.memory_space<vmem>>, vector<1x23x23xf32>
    %63 = vector.shape_cast %62 : vector<1x23x23xf32> to vector<23x23xf32>
    %cst_24 = arith.constant dense<0.000000e+00> : vector<23x32xf32>
    %64 = tpu.matmul %61, %2, %cst_24 {dimension_numbers = #tpu.dot_dimension_numbers<[1], [0], [0], [1], [0, 0, 1, 1], [], []>} : vector<23x16xf32>, vector<16x32xf32>, vector<23x32xf32> -> vector<23x32xf32>
    %65 = arith.addf %64, %8 : vector<23x32xf32>
    %cst_25 = arith.constant 0.00999999977 : f32
    %66 = vector.broadcast %cst_25 : f32 to vector<23x32xf32>
    %67 = arith.mulf %66, %65 : vector<23x32xf32>
    %68 = arith.maximumf %65, %67 : vector<23x32xf32>
    %69 = arith.mulf %68, %21 : vector<23x32xf32>
    %cst_26 = arith.constant dense<0.000000e+00> : vector<23x32xf32>
    %70 = tpu.matmul %69, %3, %cst_26 {dimension_numbers = #tpu.dot_dimension_numbers<[1], [0], [0], [1], [0, 0, 1, 1], [], []>} : vector<23x32xf32>, vector<32x32xf32>, vector<23x32xf32> -> vector<23x32xf32>
    %cst_27 = arith.constant dense<0.000000e+00> : vector<23x32xf32>
    %71 = tpu.matmul %63, %70, %cst_27 {dimension_numbers = #tpu.dot_dimension_numbers<[1], [0], [0], [1], [0, 0, 1, 1], [], []>} : vector<23x23xf32>, vector<23x32xf32>, vector<23x32xf32> -> vector<23x32xf32>
    %72 = arith.addf %71, %11 : vector<23x32xf32>
    %cst_28 = arith.constant 0.00999999977 : f32
    %73 = vector.broadcast %cst_28 : f32 to vector<23x32xf32>
    %74 = arith.mulf %73, %72 : vector<23x32xf32>
    %75 = arith.maximumf %72, %74 : vector<23x32xf32>
    %76 = arith.mulf %75, %24 : vector<23x32xf32>
    %cst_29 = arith.constant dense<0.000000e+00> : vector<23x32xf32>
    %77 = tpu.matmul %76, %4, %cst_29 {dimension_numbers = #tpu.dot_dimension_numbers<[1], [0], [0], [1], [0, 0, 1, 1], [], []>} : vector<23x32xf32>, vector<32x32xf32>, vector<23x32xf32> -> vector<23x32xf32>
    %78 = arith.addf %77, %14 : vector<23x32xf32>
    %cst_30 = arith.constant 0.00999999977 : f32
    %79 = vector.broadcast %cst_30 : f32 to vector<23x32xf32>
    %80 = arith.mulf %79, %78 : vector<23x32xf32>
    %81 = arith.maximumf %78, %80 : vector<23x32xf32>
    %82 = arith.mulf %81, %27 : vector<23x32xf32>
    %cst_31 = arith.constant dense<0.000000e+00> : vector<23x128xf32>
    %83 = tpu.matmul %82, %5, %cst_31 {dimension_numbers = #tpu.dot_dimension_numbers<[1], [0], [0], [1], [0, 0, 1, 1], [], []>} : vector<23x32xf32>, vector<32x128xf32>, vector<23x128xf32> -> vector<23x128xf32>
    %84 = arith.addf %83, %17 : vector<23x128xf32>
    %85 = arith.mulf %84, %30 : vector<23x128xf32>
    %c1_32 = arith.constant 1 : index
    %c0_33 = arith.constant 0 : index
    %c0_34 = arith.constant 0 : index
    %86 = vector.load %arg5[%c1_32, %c0_33, %c0_34] : memref<4x23x128xf32, #tpu.memory_space<vmem>>, vector<1x23x128xf32>
    %87 = vector.shape_cast %86 : vector<1x23x128xf32> to vector<23x128xf32>
    %88 = vector.shape_cast %85 : vector<23x128xf32> to vector<1x23x128xf32>
    tpu.vector_store %arg5[%c1_32, %c0_33, %c0_34], %88 {strides = array<i32>} : memref<4x23x128xf32, #tpu.memory_space<vmem>>, vector<1x23x128xf32>,
    %c2 = arith.constant 2 : index
    %c0_35 = arith.constant 0 : index
    %c0_36 = arith.constant 0 : index
    %89 = vector.load %arg3[%c2, %c0_35, %c0_36] : memref<4x23x16xf32, #tpu.memory_space<vmem>>, vector<1x23x16xf32>
    %90 = vector.shape_cast %89 : vector<1x23x16xf32> to vector<23x16xf32>
    %c2_37 = arith.constant 2 : index
    %c0_38 = arith.constant 0 : index
    %c0_39 = arith.constant 0 : index
    %91 = vector.load %arg4[%c2_37, %c0_38, %c0_39] : memref<4x23x23xf32, #tpu.memory_space<vmem>>, vector<1x23x23xf32>
    %92 = vector.shape_cast %91 : vector<1x23x23xf32> to vector<23x23xf32>
    %cst_40 = arith.constant dense<0.000000e+00> : vector<23x32xf32>
    %93 = tpu.matmul %90, %2, %cst_40 {dimension_numbers = #tpu.dot_dimension_numbers<[1], [0], [0], [1], [0, 0, 1, 1], [], []>} : vector<23x16xf32>, vector<16x32xf32>, vector<23x32xf32> -> vector<23x32xf32>
    %94 = arith.addf %93, %8 : vector<23x32xf32>
    %cst_41 = arith.constant 0.00999999977 : f32
    %95 = vector.broadcast %cst_41 : f32 to vector<23x32xf32>
    %96 = arith.mulf %95, %94 : vector<23x32xf32>
    %97 = arith.maximumf %94, %96 : vector<23x32xf32>
    %98 = arith.mulf %97, %21 : vector<23x32xf32>
    %cst_42 = arith.constant dense<0.000000e+00> : vector<23x32xf32>
    %99 = tpu.matmul %98, %3, %cst_42 {dimension_numbers = #tpu.dot_dimension_numbers<[1], [0], [0], [1], [0, 0, 1, 1], [], []>} : vector<23x32xf32>, vector<32x32xf32>, vector<23x32xf32> -> vector<23x32xf32>
    %cst_43 = arith.constant dense<0.000000e+00> : vector<23x32xf32>
    %100 = tpu.matmul %92, %99, %cst_43 {dimension_numbers = #tpu.dot_dimension_numbers<[1], [0], [0], [1], [0, 0, 1, 1], [], []>} : vector<23x23xf32>, vector<23x32xf32>, vector<23x32xf32> -> vector<23x32xf32>
    %101 = arith.addf %100, %11 : vector<23x32xf32>
    %cst_44 = arith.constant 0.00999999977 : f32
    %102 = vector.broadcast %cst_44 : f32 to vector<23x32xf32>
    %103 = arith.mulf %102, %101 : vector<23x32xf32>
    %104 = arith.maximumf %101, %103 : vector<23x32xf32>
    %105 = arith.mulf %104, %24 : vector<23x32xf32>
    %cst_45 = arith.constant dense<0.000000e+00> : vector<23x32xf32>
    %106 = tpu.matmul %105, %4, %cst_45 {dimension_numbers = #tpu.dot_dimension_numbers<[1], [0], [0], [1], [0, 0, 1, 1], [], []>} : vector<23x32xf32>, vector<32x32xf32>, vector<23x32xf32> -> vector<23x32xf32>
    %107 = arith.addf %106, %14 : vector<23x32xf32>
    %cst_46 = arith.constant 0.00999999977 : f32
    %108 = vector.broadcast %cst_46 : f32 to vector<23x32xf32>
    %109 = arith.mulf %108, %107 : vector<23x32xf32>
    %110 = arith.maximumf %107, %109 : vector<23x32xf32>
    %111 = arith.mulf %110, %27 : vector<23x32xf32>
    %cst_47 = arith.constant dense<0.000000e+00> : vector<23x128xf32>
    %112 = tpu.matmul %111, %5, %cst_47 {dimension_numbers = #tpu.dot_dimension_numbers<[1], [0], [0], [1], [0, 0, 1, 1], [], []>} : vector<23x32xf32>, vector<32x128xf32>, vector<23x128xf32> -> vector<23x128xf32>
    %113 = arith.addf %112, %17 : vector<23x128xf32>
    %114 = arith.mulf %113, %30 : vector<23x128xf32>
    %c2_48 = arith.constant 2 : index
    %c0_49 = arith.constant 0 : index
    %c0_50 = arith.constant 0 : index
    %115 = vector.load %arg5[%c2_48, %c0_49, %c0_50] : memref<4x23x128xf32, #tpu.memory_space<vmem>>, vector<1x23x128xf32>
    %116 = vector.shape_cast %115 : vector<1x23x128xf32> to vector<23x128xf32>
    %117 = vector.shape_cast %114 : vector<23x128xf32> to vector<1x23x128xf32>
    tpu.vector_store %arg5[%c2_48, %c0_49, %c0_50], %117 {strides = array<i32>} : memref<4x23x128xf32, #tpu.memory_space<vmem>>, vector<1x23x128xf32>,
    %c3 = arith.constant 3 : index
    %c0_51 = arith.constant 0 : index
    %c0_52 = arith.constant 0 : index
    %118 = vector.load %arg3[%c3, %c0_51, %c0_52] : memref<4x23x16xf32, #tpu.memory_space<vmem>>, vector<1x23x16xf32>
    %119 = vector.shape_cast %118 : vector<1x23x16xf32> to vector<23x16xf32>
    %c3_53 = arith.constant 3 : index
    %c0_54 = arith.constant 0 : index
    %c0_55 = arith.constant 0 : index
    %120 = vector.load %arg4[%c3_53, %c0_54, %c0_55] : memref<4x23x23xf32, #tpu.memory_space<vmem>>, vector<1x23x23xf32>
    %121 = vector.shape_cast %120 : vector<1x23x23xf32> to vector<23x23xf32>
    %cst_56 = arith.constant dense<0.000000e+00> : vector<23x32xf32>
    %122 = tpu.matmul %119, %2, %cst_56 {dimension_numbers = #tpu.dot_dimension_numbers<[1], [0], [0], [1], [0, 0, 1, 1], [], []>} : vector<23x16xf32>, vector<16x32xf32>, vector<23x32xf32> -> vector<23x32xf32>
    %123 = arith.addf %122, %8 : vector<23x32xf32>
    %cst_57 = arith.constant 0.00999999977 : f32
    %124 = vector.broadcast %cst_57 : f32 to vector<23x32xf32>
    %125 = arith.mulf %124, %123 : vector<23x32xf32>
    %126 = arith.maximumf %123, %125 : vector<23x32xf32>
    %127 = arith.mulf %126, %21 : vector<23x32xf32>
    %cst_58 = arith.constant dense<0.000000e+00> : vector<23x32xf32>
    %128 = tpu.matmul %127, %3, %cst_58 {dimension_numbers = #tpu.dot_dimension_numbers<[1], [0], [0], [1], [0, 0, 1, 1], [], []>} : vector<23x32xf32>, vector<32x32xf32>, vector<23x32xf32> -> vector<23x32xf32>
    %cst_59 = arith.constant dense<0.000000e+00> : vector<23x32xf32>
    %129 = tpu.matmul %121, %128, %cst_59 {dimension_numbers = #tpu.dot_dimension_numbers<[1], [0], [0], [1], [0, 0, 1, 1], [], []>} : vector<23x23xf32>, vector<23x32xf32>, vector<23x32xf32> -> vector<23x32xf32>
    %130 = arith.addf %129, %11 : vector<23x32xf32>
    %cst_60 = arith.constant 0.00999999977 : f32
    %131 = vector.broadcast %cst_60 : f32 to vector<23x32xf32>
    %132 = arith.mulf %131, %130 : vector<23x32xf32>
    %133 = arith.maximumf %130, %132 : vector<23x32xf32>
    %134 = arith.mulf %133, %24 : vector<23x32xf32>
    %cst_61 = arith.constant dense<0.000000e+00> : vector<23x32xf32>
    %135 = tpu.matmul %134, %4, %cst_61 {dimension_numbers = #tpu.dot_dimension_numbers<[1], [0], [0], [1], [0, 0, 1, 1], [], []>} : vector<23x32xf32>, vector<32x32xf32>, vector<23x32xf32> -> vector<23x32xf32>
    %136 = arith.addf %135, %14 : vector<23x32xf32>
    %cst_62 = arith.constant 0.00999999977 : f32
    %137 = vector.broadcast %cst_62 : f32 to vector<23x32xf32>
    %138 = arith.mulf %137, %136 : vector<23x32xf32>
    %139 = arith.maximumf %136, %138 : vector<23x32xf32>
    %140 = arith.mulf %139, %27 : vector<23x32xf32>
    %cst_63 = arith.constant dense<0.000000e+00> : vector<23x128xf32>
    %141 = tpu.matmul %140, %5, %cst_63 {dimension_numbers = #tpu.dot_dimension_numbers<[1], [0], [0], [1], [0, 0, 1, 1], [], []>} : vector<23x32xf32>, vector<32x128xf32>, vector<23x128xf32> -> vector<23x128xf32>
    %142 = arith.addf %141, %17 : vector<23x128xf32>
    %143 = arith.mulf %142, %30 : vector<23x128xf32>
    %c3_64 = arith.constant 3 : index
    %c0_65 = arith.constant 0 : index
    %c0_66 = arith.constant 0 : index
    %144 = vector.load %arg5[%c3_64, %c0_65, %c0_66] : memref<4x23x128xf32, #tpu.memory_space<vmem>>, vector<1x23x128xf32>
    %145 = vector.shape_cast %144 : vector<1x23x128xf32> to vector<23x128xf32>
    %146 = vector.shape_cast %143 : vector<23x128xf32> to vector<1x23x128xf32>
    tpu.vector_store %arg5[%c3_64, %c0_65, %c0_66], %146 {strides = array<i32>} : memref<4x23x128xf32, #tpu.memory_space<vmem>>, vector<1x23x128xf32>,
    return
  }
  func.func @transform_0(%arg0: i32) -> (i32, i32) {
    %c0_i32 = arith.constant 0 : i32
    %c0_i32_0 = arith.constant 0 : i32
    %c0_i32_1 = arith.constant 0 : i32
    return %c0_i32, %c0_i32_0 : i32, i32
  }
  func.func @transform_1(%arg0: i32) -> (i32, i32) {
    %c0_i32 = arith.constant 0 : i32
    %c0_i32_0 = arith.constant 0 : i32
    %c0_i32_1 = arith.constant 0 : i32
    return %c0_i32, %c0_i32_0 : i32, i32
  }
  func.func @transform_2(%arg0: i32) -> (i32, i32, i32) {
    %c0_i32 = arith.constant 0 : i32
    %c0_i32_0 = arith.constant 0 : i32
    %c0_i32_1 = arith.constant 0 : i32
    return %arg0, %c0_i32, %c0_i32_0 : i32, i32, i32
  }
  func.func @transform_3(%arg0: i32) -> (i32, i32, i32) {
    %c0_i32 = arith.constant 0 : i32
    %c0_i32_0 = arith.constant 0 : i32
    %c0_i32_1 = arith.constant 0 : i32
    return %arg0, %c0_i32, %c0_i32_0 : i32, i32, i32
  }
  func.func @transform_4(%arg0: i32) -> (i32, i32, i32) {
    %c0_i32 = arith.constant 0 : i32
    %c0_i32_0 = arith.constant 0 : i32
    %c0_i32_1 = arith.constant 0 : i32
    return %arg0, %c0_i32, %c0_i32_0 : i32, i32, i32
  }
}

</mosaic_0001>

<bundles_post_ra>
// kernel: sub_actor_forward.1
= control target key start
LH: loop header
LB: loop body
LE: loop exit
PB: predicated region body
PF: predicated region fallthrough
CT: control target
= control target key end

     0   :  { %s3055_s15 = smov 0   ;;  %s3596_s0 = inlined_call_operand.vmem [shape: f32[112,128], index: 0, kind: input, shape index: {}]   ;;  %s3597_s1 = inlined_call_operand.vmem [shape: f32[32,128], index: 1, kind: input, shape index: {}]   ;;  %s3598_s2 = inlined_call_operand.vmem [shape: f32[8,23,16], index: 2, kind: input, shape index: {}]   ;;  %s3599_s3 = inlined_call_operand.vmem [shape: f32[8,23,23], index: 3, kind: input, shape index: {}]   ;;  %s3600_s4 = inlined_call_operand.vmem [shape: f32[8,23,128], index: 4, kind: output, shape index: {}]  }
   0x1 LB: > { %s2347_s16 = sadd.s32 4294967295, %s3021_s15   ;;  %p2351_p0 = scmp.ge.s32.totalorder %s3021_s15, 1  ;;  %s3021_s15 = sphi %s3055_s15, %s14_s15  }
   0x2   : > { %p176_p1 = scmp.lt.s32.totalorder %s3021_s15, 3 }
   0x4   : > { %p177_p2 = pnand %p2351_p0, %p176_p1 }
   0x5   : > { %v231_v0 = vld [vmem:[%s3596_s0] sm:$0xff] (!%p177_p2)  ;;  %v232_v1 = vld [vmem:[%s3596_s0 + $0x8] sm:$0xff] (!%p177_p2)  ;;  %s2352_s21 = sshll.u32 (!%p177_p2), %s2347_s16, 2  ;;  %v3023_v2 = vmov (!%p177_p2), 0.0|0.0   ;;  %vm3024_vm0 = vmmov (!%p177_p2), 0   ;;  %v3025_v4 = vmov (!%p177_p2), 0.0   ;;  %v249_v18 = vlaneseq (!%p177_p2) }
   0x6   : > { %180 = sbr.rel (%p177_p2) target bundleno = 3151 (0xc4f), region = 36  ;;  %2895 = vmatprep.subr.bf16.mxu0 (!%p177_p2), %v3023_v2  ;;  %v3070_v3 = vpack.c.bf16 (!%p177_p2), %v232_v1, %v231_v0  ;;  %2583 = vmatprep.mubr.msk.f32.mxu0 (!%p177_p2), %vm3024_vm0, %v3025_v4  ;;  %p211_p3 = scmp.lt.s32.totalorder (!%p177_p2), %s2352_s21, 7  ;;  %v3077_v5 = vld [vmem:[%s3597_s1 + $0x8] sm:$0xff] (!%p177_p2)  ;;  %v3082_v6 = vld [vmem:[%s3597_s1 + $0x18] sm:$0xff] (!%p177_p2)  ;;  %v3026_v7 = vmov (!%p177_p2), 0   ;;  %v3089_v8 = vld [vmem:[%s3597_s1 + $0x10] sm:$0xff] (!%p177_p2) }
   0x7   : > { %3007 = vset.pattern.permute.xlu0 (!%p177_p2), %v3026_v7  ;;  %3008 = vset.pattern.permute.xlu1 (!%p177_p2), %v3026_v7  ;;  %vm322_vm1 = vcmask (!%p177_p2), 130048   ;;  %v233_v12 = vld [vmem:[%s3596_s0 + $0x10] sm:$0xff] (!%p177_p2)  ;;  %v234_v13 = vld [vmem:[%s3596_s0 + $0x18] sm:$0xff] (!%p177_p2)  ;;  %v235_v15 = vld [vmem:[%s3596_s0 + $0x20] sm:$0xff] (!%p177_p2)  ;;  %v3137_v19 = vshrl.u32 (!%p177_p2), %v249_v18, 7  ;;  %vm421_vm2 = vcmask (!%p177_p2), 261120  }
   0x8   : > { %2897 = vmatpush3.bf16.msra.mxu0 (!%p177_p2), %v3070_v3  ;;  %267 = vperm.xlu0 (!%p177_p2), %3007, %v3077_v5   ;;  %v3123_v14 = vpack.c.bf16 (!%p177_p2), %v234_v13, %v233_v12  ;;  %v236_v16 = vld [vmem:[%s3596_s0 + $0x28] sm:$0xff] (!%p177_p2)  ;;  %v3143_v21 = vld [vmem:[%s3597_s1] sm:$0xff] (!%p177_p2)  ;;  %v3027_v44 = vmov (!%p177_p2), 1   ;;  %vm521_vm3 = vcmask (!%p177_p2), 1046528   ;;  %vm511_vm4 = vcmask (!%p177_p2), 187392   ;;  %v237_v55 = vld [vmem:[%s3596_s0 + $0x30] sm:$0xff] (!%p177_p2) }
   0x9   : > { %277 = vperm.xlu1 (!%p177_p2), %3008, %v3082_v6   ;;  %2898 = vmatprep.subr.bf16.mxu1 (!%p177_p2), %v3023_v2  ;;  %v3133_v17 = vpack.c.bf16 (!%p177_p2), %v236_v16, %v235_v15  ;;  %v251_v20 = vsub.s32 (!%p177_p2), 0, %v3137_v19  ;;  %v238_v56 = vld [vmem:[%s3596_s0 + $0x38] sm:$0xff] (!%p177_p2)  ;;  %v239_v58 = vld [vmem:[%s3596_s0 + $0x40] sm:$0xff] (!%p177_p2)  ;;  %v240_v59 = vld [vmem:[%s3596_s0 + $0x48] sm:$0xff] (!%p177_p2)  ;;  %v3028_v61 = vmov (!%p177_p2), 2   ;;  %v255_v62 = vsub.s32 (!%p177_p2), 1, %v3137_v19 }
   0xa   : > { %2600 = vmatprep.mubr.msk.f32.mxu1 (!%p177_p2), %vm3024_vm0, %v3025_v4  ;;  %2904 = vmatprep.subr.bf16.mxu0 (!%p177_p2), %v3023_v2  ;;  %v3199_v57 = vpack.c.bf16 (!%p177_p2), %v238_v56, %v237_v55  ;;  %v3209_v60 = vpack.c.bf16 (!%p177_p2), %v240_v59, %v239_v58 }
   0xb   : > { %2900 = vmatpush3.bf16.msra.mxu1 (!%p177_p2), %v3123_v14  ;;  %v3146_v22 = vrot.slane (!%p177_p2), %v3143_v21, %v251_v20  ;;  %v3218_v63 = vrot.slane (!%p177_p2), %v3143_v21, %v255_v62 }
   0xc   : > { %272 = vperm.xlu0 (!%p177_p2), %3007, %v3089_v8   ;;  %2901 = vmatprep.subr.bf16.mxu1 (!%p177_p2), %v3023_v2 }
   0xd   : > { %s3602_s21 = smov (!%p211_p3, %s2352_s21), 7  ;;  %3009 = vset.pattern.permute.xlu1 %v3027_v44 }
   0xe   : > { %s3093_s28 = smul.u32 24, %s3602_s21  ;;  %281 = vperm.xlu1 %3009, %v3077_v5  }
   0xf   : > { %2903 = vmatpush3.bf16.msra.mxu1 %v3133_v17 }
  0x10   : > { %s3102_s5 = scalar_lea.vmem %s3598_s2, %s3093_s28  ;;  %2907 = vmatprep.subr.bf16.mxu1 %v3023_v2  ;;  %3010 = vset.pattern.permute.xlu0 %v3027_v44  ;;  %s3176_s19 = scalar_lea.vmem %s3599_s3, %s3093_s28  ;;  %v3029_v44 = vmov 3  }
  0x11   : > { %v316_v9 = vld [vmem:[%s3102_s5] sm:$0xff]  ;;  %v317_v10 = vld [vmem:[%s3102_s5 + $0x8] sm:$0xff]  ;;  %v318_v11 = vld [vmem:[%s3102_s5 + $0x10] sm:$0x7f]  ;;  %285 = vperm.xlu0 %3010, %v3089_v8   ;;  %s3337_s14 = scalar_lea.vmem %s3600_s4, %s3093_s28 }
  0x12   : > { %2584 = vmatmul.mubr.msk.f32.vlgmr.msra.gmra.mrb[0].mxu0 %vm322_vm1, %v316_v9  ;;  %289 = vperm.xlu1 %3009, %v3082_v6   ;;  %v319_v52 = vld [vmem:[%s3176_s19] sm:$0xff]  ;;  %v320_v53 = vld [vmem:[%s3176_s19 + $0x8] sm:$0xff]  ;;  %v321_v54 = vld [vmem:[%s3176_s19 + $0x10] sm:$0x7f] }
  0x13   : > { %2586 = vmatprep.mubr.msk.f32.mxu0 %vm3024_vm0, %v3025_v4 }
  0x15   : > { %3012 = vset.pattern.permute.xlu0 %v3028_v61 }
  0x16   : > { %2587 = vmatmul.mubr.msk.f32.gmra.mrb[2].mxu0 %vm322_vm1, %v317_v10  ;;  %3011 = vset.pattern.permute.xlu1 %v3028_v61 }
  0x17   : > { %2589 = vmatprep.mubr.msk.f32.mxu0 %vm3024_vm0, %v3025_v4  ;;  %293 = vperm.xlu1 %3011, %v3077_v5  }
  0x18   : > { %297 = vperm.xlu0 %3012, %v3089_v8  }
  0x1a   : > { %2590 = vmatmul.mubr.msk.f32.gmra.mrb[4].mxu0 %vm322_vm1, %v318_v11 }
  0x1b   : > { %2615 = vmatprep.mubr.msk.f32.mxu0 %vm3024_vm0, %v3025_v4  ;;  %301 = vperm.xlu1 %3011, %v3082_v6  }
  0x1c   : > { %3014 = vset.pattern.permute.xlu0 %v3029_v44 }
  0x1d   : > { %309 = vperm.xlu0 %3014, %v3089_v8  }
  0x1f   : > { %3013 = vset.pattern.permute.xlu1 %v3029_v44 }
  0x20   : > { %305 = vperm.xlu1 %3013, %v3077_v5  }
  0x24   : > { %313 = vperm.xlu1 %3013, %v3082_v6  }
  0x87   : > { %v3149_v27 = vpop.permute.xlu0 %267 }
  0x88   : > { %v3160_v41 = vpop.permute.xlu1 %277 }
  0x8b   : > { %v3155_v38 = vpop.permute.xlu0 %272 }
  0x8d   : > { %v3222_v15 = vpop.permute.xlu1 %281 }
  0xe5   : > { %v398_v23 = vpop.f32.mrb[0].mxu0 }
  0xe6   : > { %v399_v24 = vadd.f32 %v398_v23, %v3146_v22  ;;  %v2585_v25 = vpop.f32.mrb[1].mxu0  ;;  %v3225_v23 = vpop.permute.xlu0 %285 }
  0xe8   : > { %v412_v26 = vmul.f32 0.01, %v399_v24 }
  0xe9   : > { %v403_v28 = vpop.f32.mrb[2].mxu0 }
  0xea   : > { %v415_v29 = vmax.f32 %v399_v24, %v412_v26  ;;  %v404_v30 = vadd.f32 %v403_v28, %v3146_v22  ;;  %v2588_v31 = vpop.f32.mrb[3].mxu0  ;;  %v3287_v56 = vpop.permute.xlu0 %297 }
  0xeb   : > { %v3235_v31 = vpop.permute.xlu1 %289 }
  0xec   : > { %v418_v32 = vmul.f32 %v415_v29, %v3149_v27  ;;  %v413_v33 = vmul.f32 0.01, %v404_v30 }
  0xed   : > { %v408_v34 = vpop.f32.mrb[4].mxu0 }
  0xee   : > { %v416_v35 = vmax.f32 %v404_v30, %v413_v33  ;;  %v409_v36 = vadd.f32 %v408_v34, %v3146_v22  ;;  %2601 = vmatmul.mubr.msk.f32.vlgmr.msra.gmra.mrb[0].mxu1 %vm421_vm2, %v418_v32  ;;  %v2591_v37 = vpop.f32.mrb[5].mxu0  ;;  %v2374_v33 = vld [vmem:[%s3102_s5 + $0x18] sm:$0xff]  ;;  %v2375_v34 = vld [vmem:[%s3102_s5 + $0x20] sm:$0xff] }
  0xef   : > { %2603 = vmatprep.mubr.msk.f32.mxu1 %vm3024_vm0, %v3025_v4  ;;  %2909 = vmatpush3.bf16.msra.mxu1 %v3199_v57  ;;  %v242_v37 = vld [vmem:[%s3596_s0 + $0x58] sm:$0xff]  ;;  %v3284_v5 = vpop.permute.xlu1 %293 }
  0xf0   : > { %v419_v39 = vmul.f32 %v416_v35, %v3155_v38  ;;  %v414_v40 = vmul.f32 0.01, %v409_v36  ;;  %2910 = vmatprep.subr.bf16.mxu1 %v3023_v2  ;;  %v2376_v35 = vld [vmem:[%s3102_s5 + $0x28] sm:$0x7f] }
  0xf2   : > { %v417_v42 = vmax.f32 %v409_v36, %v414_v40  ;;  %2604 = vmatmul.mubr.msk.f32.gmra.mrb[2].mxu1 %vm421_vm2, %v419_v39  ;;  %v241_v36 = vld [vmem:[%s3596_s0 + $0x50] sm:$0xff]  ;;  %v243_v40 = vld [vmem:[%s3596_s0 + $0x60] sm:$0xff] }
  0xf3   : > { %2606 = vmatprep.mubr.msk.f32.mxu1 %vm3024_vm0, %v3025_v4  ;;  %2912 = vmatpush3.bf16.msra.mxu1 %v3209_v60  ;;  %v3261_v39 = vpack.c.bf16 %v242_v37, %v241_v36  ;;  %v263_v37 = vsub.s32 3, %v3137_v19 }
  0xf4   : > { %v420_v43 = vmul.f32 %v417_v42, %v3160_v41  ;;  %2919 = vmatprep.subr.bf16.mxu1 %v3023_v2  ;;  %v244_v42 = vld [vmem:[%s3596_s0 + $0x68] sm:$0xff] }
  0xf6   : > { %2607 = vmatmul.mubr.msk.f32.gmra.mrb[4].mxu1 %vm421_vm2, %v420_v43  ;;  %v3271_v43 = vpack.c.bf16 %v244_v42, %v243_v40  ;;  %v3328_v40 = vrot.slane %v3143_v21, %v263_v37 }
  0xf7   : > { %2632 = vmatprep.mubr.msk.f32.mxu1 %vm3024_vm0, %v3025_v4 }
 0x1c1   : > { %v497_v45 = vpop.f32.mrb[0].mxu1 }
 0x1c2   : > { %v2602_v46 = vpop.f32.mrb[1].mxu1 }
 0x1c5   : > { %v502_v47 = vpop.f32.mrb[2].mxu1 }
 0x1c6   : > { %v2905_v48 = vpack.c.bf16 %v502_v47, %v497_v45  ;;  %v2605_v49 = vpop.f32.mrb[3].mxu1  ;;  %v259_v45 = vsub.s32 2, %v3137_v19 }
 0x1c8   : > { %2906 = vmatpush3.bf16.msra.mxu0 %v2905_v48  ;;  %v3280_v46 = vrot.slane %v3143_v21, %v259_v45 }
 0x1c9   : > { %v507_v50 = vpop.f32.mrb[4].mxu1  ;;  %2613 = vmatprep.subr.mxu0 %v3025_v4 }
 0x1ca   : > { %v2608_v51 = vpop.f32.mrb[5].mxu1 }
 0x1cc   : > { %2614 = vmatpush3.msk.msra.mxu0 %vm521_vm3, %v507_v50 }
 0x1cd   : > { %2616 = vmatmul.mubr.msk.f32.vlgmr.msra.gmra.mrb[6].mxu0 %vm511_vm4, %v319_v52  ;;  %2913 = vmatprep.subr.bf16.mxu0 %v3023_v2 }
 0x1ce   : > { %2618 = vmatprep.mubr.msk.f32.mxu0 %vm3024_vm0, %v3025_v4  ;;  %2915 = vmatpush3.bf16.msra.mxu0 %v3261_v39 }
 0x1cf   : > { %2916 = vmatprep.subr.bf16.mxu0 %v3023_v2 }
 0x1d1   : > { %2619 = vmatmul.mubr.msk.f32.gmra.mrb[8].mxu0 %vm511_vm4, %v320_v53 }
 0x1d2   : > { %2621 = vmatprep.mubr.msk.f32.mxu0 %vm3024_vm0, %v3025_v4  ;;  %2918 = vmatpush3.bf16.msra.mxu0 %v3271_v43 }
 0x1d3   : > { %2922 = vmatprep.subr.bf16.mxu0 %v3023_v2 }
 0x1d5   : > { %2622 = vmatmul.mubr.msk.f32.gmra.mrb[10].mxu0 %vm511_vm4, %v321_v54 }
 0x1d6   : > { %2649 = vmatprep.mubr.msk.f32.mxu0 %vm3024_vm0, %v3025_v4 }
 0x2a0   : > { %v591_v0 = vpop.f32.mrb[6].mxu0 }
 0x2a1   : > { %v592_v1 = vadd.f32 %v591_v0, %v3218_v63  ;;  %v2617_v7 = vpop.f32.mrb[7].mxu0 }
 0x2a3   : > { %v605_v9 = vmul.f32 0.01, %v592_v1 }
 0x2a4   : > { %v596_v10 = vpop.f32.mrb[8].mxu0 }
 0x2a5   : > { %v608_v11 = vmax.f32 %v592_v1, %v605_v9  ;;  %v597_v12 = vadd.f32 %v596_v10, %v3218_v63  ;;  %v2620_v13 = vpop.f32.mrb[9].mxu0 }
 0x2a7   : > { %v611_v16 = vmul.f32 %v608_v11, %v3222_v15  ;;  %v606_v18 = vmul.f32 0.01, %v597_v12  ;;  %v3298_v11 = vpop.permute.xlu1 %301 }
 0x2a8   : > { %v601_v20 = vpop.f32.mrb[10].mxu0 }
 0x2a9   : > { %v609_v24 = vmax.f32 %v597_v12, %v606_v18  ;;  %v602_v25 = vadd.f32 %v601_v20, %v3218_v63  ;;  %v2623_v26 = vpop.f32.mrb[11].mxu0  ;;  %2633 = vmatmul.mubr.msk.f32.vlgmr.msra.gmra.mrb[6].mxu1 %vm421_vm2, %v611_v16 }
 0x2aa   : > { %2635 = vmatprep.mubr.msk.f32.mxu1 %vm3024_vm0, %v3025_v4  ;;  %2921 = vmatpush3.bf16.msra.mxu1 %v3070_v3 }
 0x2ab   : > { %v607_v28 = vmul.f32 0.01, %v602_v25  ;;  %v612_v29 = vmul.f32 %v609_v24, %v3225_v23  ;;  %2928 = vmatprep.subr.bf16.mxu1 %v3023_v2  ;;  %v3330_v44 = vpop.permute.xlu1 %305 }
 0x2ad   : > { %v610_v30 = vmax.f32 %v602_v25, %v607_v28  ;;  %2636 = vmatmul.mubr.msk.f32.gmra.mrb[8].mxu1 %vm421_vm2, %v612_v29 }
 0x2ae   : > { %2638 = vmatprep.mubr.msk.f32.mxu1 %vm3024_vm0, %v3025_v4 }
 0x2af   : > { %v613_v32 = vmul.f32 %v610_v30, %v3235_v31 }
 0x2b1   : > { %2639 = vmatmul.mubr.msk.f32.gmra.mrb[10].mxu1 %vm421_vm2, %v613_v32 }
 0x2b2   : > { %2662 = vmatprep.mubr.msk.f32.mxu1 %vm3024_vm0, %v3025_v4 }
 0x2b5   : > { %2663 = vmatmul.mubr.msk.f32.vlgmr.msra.gmra.mrb[12].mxu1 %vm322_vm1, %v2374_v33 }
 0x2b6   : > { %2665 = vmatprep.mubr.msk.f32.mxu1 %vm3024_vm0, %v3025_v4 }
 0x2b9   : > { %2666 = vmatmul.mubr.msk.f32.gmra.mrb[14].mxu1 %vm322_vm1, %v2375_v34 }
 0x2ba   : > { %2668 = vmatprep.mubr.msk.f32.mxu1 %vm3024_vm0, %v3025_v4 }
 0x2bd   : > { %2669 = vmatmul.mubr.msk.f32.gmra.mrb[16].mxu1 %vm322_vm1, %v2376_v35 }
 0x2be   : > { %2694 = vmatprep.mubr.msk.f32.mxu1 %vm3024_vm0, %v3025_v4 }
 0x37c   : > { %v689_v47 = vpop.f32.mrb[6].mxu1 }
 0x37d   : > { %v690_v48 = vadd.f32 %v689_v47, %v3280_v46  ;;  %v2634_v49 = vpop.f32.mrb[7].mxu1 }
 0x37e   : > { %v3340_v49 = vpop.permute.xlu0 %309 }
 0x37f   : > { %v703_v50 = vmul.f32 0.01, %v690_v48 }
 0x380   : > { %v694_v51 = vpop.f32.mrb[8].mxu1 }
 0x381   : > { %v706_v52 = vmax.f32 %v690_v48, %v703_v50  ;;  %v695_v53 = vadd.f32 %v694_v51, %v3280_v46  ;;  %v2637_v54 = vpop.f32.mrb[9].mxu1 }
 0x383   : > { %v709_v8 = vmul.f32 %v706_v52, %v3284_v5  ;;  %v704_v6 = vmul.f32 0.01, %v695_v53 }
 0x384   : > { %v699_v55 = vpop.f32.mrb[10].mxu1 }
 0x385   : > { %v707_v58 = vmax.f32 %v695_v53, %v704_v6  ;;  %v700_v59 = vadd.f32 %v699_v55, %v3280_v46  ;;  %v2640_v61 = vpop.f32.mrb[11].mxu1  ;;  %2650 = vmatmul.mubr.msk.f32.vlgmr.msra.gmra.mrb[12].mxu0 %vm421_vm2, %v709_v8  ;;  %v3345_v53 = vpop.permute.xlu1 %313 }
 0x386   : > { %2652 = vmatprep.mubr.msk.f32.mxu0 %vm3024_vm0, %v3025_v4  ;;  %2924 = vmatpush3.bf16.msra.mxu0 %v3123_v14 }
 0x387   : > { %v705_v62 = vmul.f32 0.01, %v700_v59  ;;  %v710_v0 = vmul.f32 %v707_v58, %v3287_v56  ;;  %2925 = vmatprep.subr.bf16.mxu0 %v3023_v2 }
 0x388   : > { %v890_v1 = vpop.f32.mrb[12].mxu1 }
 0x389   : > { %v708_v7 = vmax.f32 %v700_v59, %v705_v62  ;;  %v891_v9 = vadd.f32 %v890_v1, %v3146_v22  ;;  %2653 = vmatmul.mubr.msk.f32.gmra.mrb[14].mxu0 %vm421_vm2, %v710_v0  ;;  %v2664_v10 = vpop.f32.mrb[13].mxu1 }
 0x38a   : > { %2655 = vmatprep.mubr.msk.f32.mxu0 %vm3024_vm0, %v3025_v4  ;;  %2927 = vmatpush3.bf16.msra.mxu0 %v3133_v17  ;;  %v2379_v10 = vld [vmem:[%s3176_s19 + $0x28] sm:$0x7f] }
 0x38b   : > { %v711_v12 = vmul.f32 %v708_v7, %v3298_v11  ;;  %v904_v13 = vmul.f32 0.01, %v891_v9  ;;  %2931 = vmatprep.subr.bf16.mxu0 %v3023_v2  ;;  %v2377_v7 = vld [vmem:[%s3176_s19 + $0x18] sm:$0xff] }
 0x38c   : > { %v895_v16 = vpop.f32.mrb[14].mxu1 }
 0x38d   : > { %v907_v18 = vmax.f32 %v891_v9, %v904_v13  ;;  %v896_v20 = vadd.f32 %v895_v16, %v3146_v22  ;;  %2656 = vmatmul.mubr.msk.f32.gmra.mrb[16].mxu0 %vm421_vm2, %v711_v12  ;;  %v2667_v24 = vpop.f32.mrb[15].mxu1  ;;  %v2378_v9 = vld [vmem:[%s3176_s19 + $0x20] sm:$0xff] }
 0x38e   : > { %2679 = vmatprep.mubr.msk.f32.mxu0 %vm3024_vm0, %v3025_v4 }
 0x38f   : > { %v910_v25 = vmul.f32 %v907_v18, %v3149_v27  ;;  %v905_v26 = vmul.f32 0.01, %v896_v20 }
 0x390   : > { %v900_v28 = vpop.f32.mrb[16].mxu1 }
 0x391   : > { %v908_v29 = vmax.f32 %v896_v20, %v905_v26  ;;  %v901_v30 = vadd.f32 %v900_v28, %v3146_v22  ;;  %2680 = vmatmul.mubr.msk.f32.vlgmr.msra.gmra.mrb[18].mxu0 %vm421_vm2, %v910_v25  ;;  %v2670_v32 = vpop.f32.mrb[17].mxu1 }
 0x392   : > { %2682 = vmatprep.mubr.msk.f32.mxu0 %vm3024_vm0, %v3025_v4  ;;  %2933 = vmatpush3.bf16.msra.mxu0 %v3199_v57 }
 0x393   : > { %v911_v33 = vmul.f32 %v908_v29, %v3155_v38  ;;  %v906_v34 = vmul.f32 0.01, %v901_v30  ;;  %2934 = vmatprep.subr.bf16.mxu0 %v3023_v2 }
 0x395   : > { %v909_v35 = vmax.f32 %v901_v30, %v906_v34  ;;  %2683 = vmatmul.mubr.msk.f32.gmra.mrb[20].mxu0 %vm421_vm2, %v911_v33 }
 0x396   : > { %2685 = vmatprep.mubr.msk.f32.mxu0 %vm3024_vm0, %v3025_v4  ;;  %2936 = vmatpush3.bf16.msra.mxu0 %v3209_v60 }
 0x397   : > { %v912_v36 = vmul.f32 %v909_v35, %v3160_v41  ;;  %2943 = vmatprep.subr.bf16.mxu0 %v3023_v2 }
 0x399   : > { %2686 = vmatmul.mubr.msk.f32.gmra.mrb[22].mxu0 %vm421_vm2, %v912_v36 }
 0x39a   : > { %2711 = vmatprep.mubr.msk.f32.mxu0 %vm3024_vm0, %v3025_v4 }
 0x458   : > { %v787_v42 = vpop.f32.mrb[12].mxu0 }
 0x459   : > { %v788_v45 = vadd.f32 %v787_v42, %v3328_v40  ;;  %v2651_v47 = vpop.f32.mrb[13].mxu0 }
 0x45a   : > { %v2400_v47 = vld [vmem:[%s3102_s5 + $0x38] sm:$0xff] }
 0x45b   : > { %v801_v48 = vmul.f32 %v788_v45, %v3330_v44  ;;  %v2399_v45 = vld [vmem:[%s3102_s5 + $0x30] sm:$0xff] }
 0x45c   : > { %v792_v19 = vpop.f32.mrb[14].mxu0 }
 0x45d   : > { %804 = vst [vmem:[%s3337_s14] sm:$0xff] %v801_v48  ;;  %v793_v21 = vadd.f32 %v792_v19, %v3328_v40  ;;  %v2654_v50 = vpop.f32.mrb[15].mxu0  ;;  %v2401_v48 = vld [vmem:[%s3102_s5 + $0x40] sm:$0x7f] }
 0x45f   : > { %v802_v51 = vmul.f32 %v793_v21, %v3340_v49 }
 0x460   : > { %v797_v52 = vpop.f32.mrb[16].mxu0 }
 0x461   : > { %805 = vst [vmem:[%s3337_s14 + $0x8] sm:$0xff] %v802_v51  ;;  %v798_v54 = vadd.f32 %v797_v52, %v3328_v40  ;;  %v2657_v8 = vpop.f32.mrb[17].mxu0 }
 0x463   : > { %v803_v6 = vmul.f32 %v798_v54, %v3345_v53 }
 0x464   : > { %v988_v55 = vpop.f32.mrb[18].mxu0 }
 0x465   : > { %806 = vst [vmem:[%s3337_s14 + $0x10] sm:$0x7f] %v803_v6  ;;  %v2681_v58 = vpop.f32.mrb[19].mxu0 }
 0x468   : > { %v993_v59 = vpop.f32.mrb[20].mxu0 }
 0x469   : > { %v2929_v61 = vpack.c.bf16 %v993_v59, %v988_v55  ;;  %v2684_v62 = vpop.f32.mrb[21].mxu0 }
 0x46b   : > { %2930 = vmatpush3.bf16.msra.mxu1 %v2929_v61 }
 0x46c   : > { %v998_v0 = vpop.f32.mrb[22].mxu0  ;;  %2692 = vmatprep.subr.mxu1 %v3025_v4 }
 0x46d   : > { %v2687_v1 = vpop.f32.mrb[23].mxu0 }
 0x46f   : > { %2693 = vmatpush3.msk.msra.mxu1 %vm521_vm3, %v998_v0 }
 0x470   : > { %2695 = vmatmul.mubr.msk.f32.vlgmr.msra.gmra.mrb[18].mxu1 %vm511_vm4, %v2377_v7  ;;  %2937 = vmatprep.subr.bf16.mxu1 %v3023_v2 }
 0x471   : > { %2697 = vmatprep.mubr.msk.f32.mxu1 %vm3024_vm0, %v3025_v4  ;;  %2939 = vmatpush3.bf16.msra.mxu1 %v3261_v39 }
 0x472   : > { %2940 = vmatprep.subr.bf16.mxu1 %v3023_v2 }
 0x474   : > { %2698 = vmatmul.mubr.msk.f32.gmra.mrb[20].mxu1 %vm511_vm4, %v2378_v9 }
 0x475   : > { %2700 = vmatprep.mubr.msk.f32.mxu1 %vm3024_vm0, %v3025_v4  ;;  %2942 = vmatpush3.bf16.msra.mxu1 %v3271_v43 }
 0x476   : > { %2946 = vmatprep.subr.bf16.mxu1 %v3023_v2 }
 0x478   : > { %2701 = vmatmul.mubr.msk.f32.gmra.mrb[22].mxu1 %vm511_vm4, %v2379_v10 }
 0x479   : > { %2728 = vmatprep.mubr.msk.f32.mxu1 %vm3024_vm0, %v3025_v4 }
 0x543   : > { %v1080_v12 = vpop.f32.mrb[18].mxu1 }
 0x544   : > { %v1081_v13 = vadd.f32 %v1080_v12, %v3218_v63  ;;  %v2696_v16 = vpop.f32.mrb[19].mxu1 }
 0x546   : > { %v1094_v18 = vmul.f32 0.01, %v1081_v13 }
 0x547   : > { %v1085_v20 = vpop.f32.mrb[20].mxu1 }
 0x548   : > { %v1097_v24 = vmax.f32 %v1081_v13, %v1094_v18  ;;  %v1086_v25 = vadd.f32 %v1085_v20, %v3218_v63  ;;  %v2699_v26 = vpop.f32.mrb[21].mxu1 }
 0x54a   : > { %v1100_v28 = vmul.f32 %v1097_v24, %v3222_v15  ;;  %v1095_v29 = vmul.f32 0.01, %v1086_v25 }
 0x54b   : > { %v1090_v30 = vpop.f32.mrb[22].mxu1 }
 0x54c   : > { %v1098_v32 = vmax.f32 %v1086_v25, %v1095_v29  ;;  %v1091_v33 = vadd.f32 %v1090_v30, %v3218_v63  ;;  %v2702_v34 = vpop.f32.mrb[23].mxu1  ;;  %2712 = vmatmul.mubr.msk.f32.vlgmr.msra.gmra.mrb[24].mxu0 %vm421_vm2, %v1100_v28 }
 0x54d   : > { %2714 = vmatprep.mubr.msk.f32.mxu0 %vm3024_vm0, %v3025_v4  ;;  %2945 = vmatpush3.bf16.msra.mxu0 %v3070_v3 }
 0x54e   : > { %v1101_v35 = vmul.f32 %v1098_v32, %v3225_v23  ;;  %v1096_v36 = vmul.f32 0.01, %v1091_v33  ;;  %2952 = vmatprep.subr.bf16.mxu0 %v3023_v2 }
 0x550   : > { %v1099_v37 = vmax.f32 %v1091_v33, %v1096_v36  ;;  %2715 = vmatmul.mubr.msk.f32.gmra.mrb[26].mxu0 %vm421_vm2, %v1101_v35 }
 0x551   : > { %2717 = vmatprep.mubr.msk.f32.mxu0 %vm3024_vm0, %v3025_v4 }
 0x552   : > { %v1102_v42 = vmul.f32 %v1099_v37, %v3235_v31 }
 0x554   : > { %2718 = vmatmul.mubr.msk.f32.gmra.mrb[28].mxu0 %vm421_vm2, %v1102_v42 }
 0x555   : > { %2741 = vmatprep.mubr.msk.f32.mxu0 %vm3024_vm0, %v3025_v4 }
 0x558   : > { %2742 = vmatmul.mubr.msk.f32.vlgmr.msra.gmra.mrb[30].mxu0 %vm322_vm1, %v2399_v45 }
 0x559   : > { %2744 = vmatprep.mubr.msk.f32.mxu0 %vm3024_vm0, %v3025_v4 }
 0x55c   : > { %2745 = vmatmul.mubr.msk.f32.gmra.mrb[32].mxu0 %vm322_vm1, %v2400_v47 }
 0x55d   : > { %2747 = vmatprep.mubr.msk.f32.mxu0 %vm3024_vm0, %v3025_v4 }
 0x560   : > { %2748 = vmatmul.mubr.msk.f32.gmra.mrb[34].mxu0 %vm322_vm1, %v2401_v48 }
 0x561   : > { %2773 = vmatprep.mubr.msk.f32.mxu0 %vm3024_vm0, %v3025_v4 }
 0x61f   : > { %v1178_v19 = vpop.f32.mrb[24].mxu0 }
 0x620   : > { %v1179_v21 = vadd.f32 %v1178_v19, %v3280_v46  ;;  %v2713_v50 = vpop.f32.mrb[25].mxu0 }
 0x622   : > { %v1192_v51 = vmul.f32 0.01, %v1179_v21 }
 0x623   : > { %v1183_v52 = vpop.f32.mrb[26].mxu0 }
 0x624   : > { %v1195_v54 = vmax.f32 %v1179_v21, %v1192_v51  ;;  %v1184_v8 = vadd.f32 %v1183_v52, %v3280_v46  ;;  %v2716_v6 = vpop.f32.mrb[27].mxu0 }
 0x626   : > { %v1198_v55 = vmul.f32 %v1195_v54, %v3284_v5  ;;  %v1193_v58 = vmul.f32 0.01, %v1184_v8 }
 0x627   : > { %v1188_v59 = vpop.f32.mrb[28].mxu0 }
 0x628   : > { %v1196_v61 = vmax.f32 %v1184_v8, %v1193_v58  ;;  %v1189_v62 = vadd.f32 %v1188_v59, %v3280_v46  ;;  %v2719_v0 = vpop.f32.mrb[29].mxu0  ;;  %2729 = vmatmul.mubr.msk.f32.vlgmr.msra.gmra.mrb[24].mxu1 %vm421_vm2, %v1198_v55 }
 0x629   : > { %2731 = vmatprep.mubr.msk.f32.mxu1 %vm3024_vm0, %v3025_v4  ;;  %2948 = vmatpush3.bf16.msra.mxu1 %v3123_v14 }
 0x62a   : > { %v1199_v1 = vmul.f32 %v1196_v61, %v3287_v56  ;;  %v1194_v7 = vmul.f32 0.01, %v1189_v62  ;;  %2949 = vmatprep.subr.bf16.mxu1 %v3023_v2 }
 0x62b   : > { %v1380_v9 = vpop.f32.mrb[30].mxu0 }
 0x62c   : > { %v1197_v10 = vmax.f32 %v1189_v62, %v1194_v7  ;;  %v1381_v12 = vadd.f32 %v1380_v9, %v3146_v22  ;;  %2732 = vmatmul.mubr.msk.f32.gmra.mrb[26].mxu1 %vm421_vm2, %v1199_v1  ;;  %v2743_v13 = vpop.f32.mrb[31].mxu0  ;;  %v2402_v9 = vld [vmem:[%s3176_s19 + $0x30] sm:$0xff] }
 0x62d   : > { %2734 = vmatprep.mubr.msk.f32.mxu1 %vm3024_vm0, %v3025_v4  ;;  %2951 = vmatpush3.bf16.msra.mxu1 %v3133_v17 }
 0x62e   : > { %v1200_v16 = vmul.f32 %v1197_v10, %v3298_v11  ;;  %v1394_v18 = vmul.f32 0.01, %v1381_v12  ;;  %2955 = vmatprep.subr.bf16.mxu1 %v3023_v2  ;;  %v2403_v10 = vld [vmem:[%s3176_s19 + $0x38] sm:$0xff] }
 0x62f   : > { %v1385_v20 = vpop.f32.mrb[32].mxu0 }
 0x630   : > { %v1397_v24 = vmax.f32 %v1381_v12, %v1394_v18  ;;  %v1386_v25 = vadd.f32 %v1385_v20, %v3146_v22  ;;  %2735 = vmatmul.mubr.msk.f32.gmra.mrb[28].mxu1 %vm421_vm2, %v1200_v16  ;;  %v2746_v26 = vpop.f32.mrb[33].mxu0  ;;  %v2404_v12 = vld [vmem:[%s3176_s19 + $0x40] sm:$0x7f] }
 0x631   : > { %2758 = vmatprep.mubr.msk.f32.mxu1 %vm3024_vm0, %v3025_v4 }
 0x632   : > { %v1400_v28 = vmul.f32 %v1397_v24, %v3149_v27  ;;  %v1395_v29 = vmul.f32 0.01, %v1386_v25 }
 0x633   : > { %v1390_v30 = vpop.f32.mrb[34].mxu0 }
 0x634   : > { %v1398_v32 = vmax.f32 %v1386_v25, %v1395_v29  ;;  %v1391_v33 = vadd.f32 %v1390_v30, %v3146_v22  ;;  %2759 = vmatmul.mubr.msk.f32.vlgmr.msra.gmra.mrb[30].mxu1 %vm421_vm2, %v1400_v28  ;;  %v2749_v34 = vpop.f32.mrb[35].mxu0 }
 0x635   : > { %2761 = vmatprep.mubr.msk.f32.mxu1 %vm3024_vm0, %v3025_v4  ;;  %2957 = vmatpush3.bf16.msra.mxu1 %v3199_v57 }
 0x636   : > { %v1401_v35 = vmul.f32 %v1398_v32, %v3155_v38  ;;  %v1396_v36 = vmul.f32 0.01, %v1391_v33  ;;  %2958 = vmatprep.subr.bf16.mxu1 %v3023_v2 }
 0x638   : > { %v1399_v37 = vmax.f32 %v1391_v33, %v1396_v36  ;;  %2762 = vmatmul.mubr.msk.f32.gmra.mrb[32].mxu1 %vm421_vm2, %v1401_v35 }
 0x639   : > { %2764 = vmatprep.mubr.msk.f32.mxu1 %vm3024_vm0, %v3025_v4  ;;  %2960 = vmatpush3.bf16.msra.mxu1 %v3209_v60 }
 0x63a   : > { %v1402_v42 = vmul.f32 %v1399_v37, %v3160_v41  ;;  %2967 = vmatprep.subr.bf16.mxu1 %v3023_v2 }
 0x63c   : > { %2765 = vmatmul.mubr.msk.f32.gmra.mrb[34].mxu1 %vm421_vm2, %v1402_v42 }
 0x63d   : > { %2790 = vmatprep.mubr.msk.f32.mxu1 %vm3024_vm0, %v3025_v4 }
 0x6fb   : > { %v1276_v45 = vpop.f32.mrb[24].mxu1 }
 0x6fc   : > { %v1277_v47 = vadd.f32 %v1276_v45, %v3328_v40  ;;  %v2730_v48 = vpop.f32.mrb[25].mxu1 }
 0x6fd   : > { %v2426_v48 = vld [vmem:[%s3102_s5 + $0x58] sm:$0x7f] }
 0x6fe   : > { %v1290_v19 = vmul.f32 %v1277_v47, %v3330_v44  ;;  %v2425_v47 = vld [vmem:[%s3102_s5 + $0x50] sm:$0xff] }
 0x6ff   : > { %v1281_v21 = vpop.f32.mrb[26].mxu1 }
 0x700   : > { %2396 = vst [vmem:[%s3337_s14 + $0x18] sm:$0xff] %v1290_v19  ;;  %v1282_v50 = vadd.f32 %v1281_v21, %v3328_v40  ;;  %v2733_v51 = vpop.f32.mrb[27].mxu1 }
 0x702   : > { %v1291_v52 = vmul.f32 %v1282_v50, %v3340_v49 }
 0x703   : > { %v1286_v54 = vpop.f32.mrb[28].mxu1 }
 0x704   : > { %2397 = vst [vmem:[%s3337_s14 + $0x20] sm:$0xff] %v1291_v52  ;;  %v1287_v8 = vadd.f32 %v1286_v54, %v3328_v40  ;;  %v2736_v6 = vpop.f32.mrb[29].mxu1 }
 0x706   : > { %v1292_v55 = vmul.f32 %v1287_v8, %v3345_v53 }
 0x707   : > { %v1478_v58 = vpop.f32.mrb[30].mxu1 }
 0x708   : > { %2398 = vst [vmem:[%s3337_s14 + $0x28] sm:$0x7f] %v1292_v55  ;;  %v2760_v59 = vpop.f32.mrb[31].mxu1 }
 0x70b   : > { %v1483_v61 = vpop.f32.mrb[32].mxu1 }
 0x70c   : > { %v2953_v62 = vpack.c.bf16 %v1483_v61, %v1478_v58  ;;  %v2763_v0 = vpop.f32.mrb[33].mxu1 }
 0x70e   : > { %2954 = vmatpush3.bf16.msra.mxu0 %v2953_v62 }
 0x70f   : > { %v1488_v1 = vpop.f32.mrb[34].mxu1  ;;  %2771 = vmatprep.subr.mxu0 %v3025_v4 }
 0x710   : > { %v2766_v7 = vpop.f32.mrb[35].mxu1 }
 0x712   : > { %2772 = vmatpush3.msk.msra.mxu0 %vm521_vm3, %v1488_v1 }
 0x713   : > { %2774 = vmatmul.mubr.msk.f32.vlgmr.msra.gmra.mrb[36].mxu0 %vm511_vm4, %v2402_v9  ;;  %2961 = vmatprep.subr.bf16.mxu0 %v3023_v2 }
 0x714   : > { %2776 = vmatprep.mubr.msk.f32.mxu0 %vm3024_vm0, %v3025_v4  ;;  %2963 = vmatpush3.bf16.msra.mxu0 %v3261_v39 }
 0x715   : > { %2964 = vmatprep.subr.bf16.mxu0 %v3023_v2 }
 0x717   : > { %2777 = vmatmul.mubr.msk.f32.gmra.mrb[38].mxu0 %vm511_vm4, %v2403_v10 }
 0x718   : > { %2779 = vmatprep.mubr.msk.f32.mxu0 %vm3024_vm0, %v3025_v4  ;;  %2966 = vmatpush3.bf16.msra.mxu0 %v3271_v43 }
 0x719   : > { %2970 = vmatprep.subr.bf16.mxu0 %v3023_v2 }
 0x71b   : > { %2780 = vmatmul.mubr.msk.f32.gmra.mrb[40].mxu0 %vm511_vm4, %v2404_v12 }
 0x71c   : > { %2807 = vmatprep.mubr.msk.f32.mxu0 %vm3024_vm0, %v3025_v4 }
 0x7e6   : > { %v1570_v13 = vpop.f32.mrb[36].mxu0 }
 0x7e7   : > { %v1571_v16 = vadd.f32 %v1570_v13, %v3218_v63  ;;  %v2775_v18 = vpop.f32.mrb[37].mxu0 }
 0x7e9   : > { %v1584_v20 = vmul.f32 0.01, %v1571_v16 }
 0x7ea   : > { %v1575_v24 = vpop.f32.mrb[38].mxu0 }
 0x7eb   : > { %v1587_v25 = vmax.f32 %v1571_v16, %v1584_v20  ;;  %v1576_v26 = vadd.f32 %v1575_v24, %v3218_v63  ;;  %v2778_v28 = vpop.f32.mrb[39].mxu0 }
 0x7ed   : > { %v1590_v29 = vmul.f32 %v1587_v25, %v3222_v15  ;;  %v1585_v30 = vmul.f32 0.01, %v1576_v26 }
 0x7ee   : > { %v1580_v32 = vpop.f32.mrb[40].mxu0 }
 0x7ef   : > { %v1588_v33 = vmax.f32 %v1576_v26, %v1585_v30  ;;  %v1581_v34 = vadd.f32 %v1580_v32, %v3218_v63  ;;  %v2781_v35 = vpop.f32.mrb[41].mxu0  ;;  %2791 = vmatmul.mubr.msk.f32.vlgmr.msra.gmra.mrb[36].mxu1 %vm421_vm2, %v1590_v29 }
 0x7f0   : > { %2793 = vmatprep.mubr.msk.f32.mxu1 %vm3024_vm0, %v3025_v4  ;;  %2969 = vmatpush3.bf16.msra.mxu1 %v3070_v3  ;;  %v2424_v3 = vld [vmem:[%s3102_s5 + $0x48] sm:$0xff] }
 0x7f1   : > { %v1591_v36 = vmul.f32 %v1588_v33, %v3225_v23  ;;  %v1586_v37 = vmul.f32 0.01, %v1581_v34  ;;  %2976 = vmatprep.subr.bf16.mxu1 %v3023_v2 }
 0x7f3   : > { %v1589_v42 = vmax.f32 %v1581_v34, %v1586_v37  ;;  %2794 = vmatmul.mubr.msk.f32.gmra.mrb[38].mxu1 %vm421_vm2, %v1591_v36 }
 0x7f4   : > { %2796 = vmatprep.mubr.msk.f32.mxu1 %vm3024_vm0, %v3025_v4 }
 0x7f5   : > { %v1592_v45 = vmul.f32 %v1589_v42, %v3235_v31 }
 0x7f7   : > { %2797 = vmatmul.mubr.msk.f32.gmra.mrb[40].mxu1 %vm421_vm2, %v1592_v45 }
 0x7f8   : > { %2820 = vmatprep.mubr.msk.f32.mxu1 %vm3024_vm0, %v3025_v4 }
 0x7fb   : > { %2821 = vmatmul.mubr.msk.f32.vlgmr.msra.gmra.mrb[42].mxu1 %vm322_vm1, %v2424_v3 }
 0x7fc   : > { %2823 = vmatprep.mubr.msk.f32.mxu1 %vm3024_vm0, %v3025_v4 }
 0x7ff   : > { %2824 = vmatmul.mubr.msk.f32.gmra.mrb[44].mxu1 %vm322_vm1, %v2425_v47 }
 0x800   : > { %2826 = vmatprep.mubr.msk.f32.mxu1 %vm3024_vm0, %v3025_v4 }
 0x803   : > { %2827 = vmatmul.mubr.msk.f32.gmra.mrb[46].mxu1 %vm322_vm1, %v2426_v48 }
 0x804   : > { %2852 = vmatprep.mubr.msk.f32.mxu1 %vm3024_vm0, %v3025_v4 }
 0x8c2   : > { %v1668_v19 = vpop.f32.mrb[36].mxu1 }
 0x8c3   : > { %v1669_v21 = vadd.f32 %v1668_v19, %v3280_v46  ;;  %v2792_v50 = vpop.f32.mrb[37].mxu1 }
 0x8c5   : > { %v1682_v51 = vmul.f32 0.01, %v1669_v21 }
 0x8c6   : > { %v1673_v52 = vpop.f32.mrb[38].mxu1 }
 0x8c7   : > { %v1685_v54 = vmax.f32 %v1669_v21, %v1682_v51  ;;  %v1674_v8 = vadd.f32 %v1673_v52, %v3280_v46  ;;  %v2795_v6 = vpop.f32.mrb[39].mxu1 }
 0x8c8   : > { %v2427_v6 = vld [vmem:[%s3176_s19 + $0x48] sm:$0xff] }
 0x8c9   : > { %v1688_v55 = vmul.f32 %v1685_v54, %v3284_v5  ;;  %v1683_v58 = vmul.f32 0.01, %v1674_v8 }
 0x8ca   : > { %v1678_v59 = vpop.f32.mrb[40].mxu1 }
 0x8cb   : > { %v1686_v61 = vmax.f32 %v1674_v8, %v1683_v58  ;;  %v1679_v62 = vadd.f32 %v1678_v59, %v3280_v46  ;;  %v2798_v0 = vpop.f32.mrb[41].mxu1  ;;  %2808 = vmatmul.mubr.msk.f32.vlgmr.msra.gmra.mrb[42].mxu0 %vm421_vm2, %v1688_v55  ;;  %v2428_v55 = vld [vmem:[%s3176_s19 + $0x50] sm:$0xff]  ;;  %v2429_v58 = vld [vmem:[%s3176_s19 + $0x58] sm:$0x7f] }
 0x8cc   : > { %2810 = vmatprep.mubr.msk.f32.mxu0 %vm3024_vm0, %v3025_v4  ;;  %2972 = vmatpush3.bf16.msra.mxu0 %v3123_v14 }
 0x8cd   : > { %v1689_v1 = vmul.f32 %v1686_v61, %v3287_v56  ;;  %v1684_v7 = vmul.f32 0.01, %v1679_v62  ;;  %2973 = vmatprep.subr.bf16.mxu0 %v3023_v2 }
 0x8ce   : > { %v1870_v9 = vpop.f32.mrb[42].mxu1 }
 0x8cf   : > { %v1687_v10 = vmax.f32 %v1679_v62, %v1684_v7  ;;  %v1871_v12 = vadd.f32 %v1870_v9, %v3146_v22  ;;  %2811 = vmatmul.mubr.msk.f32.gmra.mrb[44].mxu0 %vm421_vm2, %v1689_v1  ;;  %v2822_v13 = vpop.f32.mrb[43].mxu1 }
 0x8d0   : > { %2813 = vmatprep.mubr.msk.f32.mxu0 %vm3024_vm0, %v3025_v4  ;;  %2975 = vmatpush3.bf16.msra.mxu0 %v3133_v17 }
 0x8d1   : > { %v1690_v16 = vmul.f32 %v1687_v10, %v3298_v11  ;;  %v1884_v14 = vmul.f32 0.01, %v1871_v12  ;;  %2979 = vmatprep.subr.bf16.mxu0 %v3023_v2 }
 0x8d2   : > { %v1875_v18 = vpop.f32.mrb[44].mxu1 }
 0x8d3   : > { %v1887_v20 = vmax.f32 %v1871_v12, %v1884_v14  ;;  %v1876_v24 = vadd.f32 %v1875_v18, %v3146_v22  ;;  %2814 = vmatmul.mubr.msk.f32.gmra.mrb[46].mxu0 %vm421_vm2, %v1690_v16  ;;  %v2825_v25 = vpop.f32.mrb[45].mxu1 }
 0x8d4   : > { %2837 = vmatprep.mubr.msk.f32.mxu0 %vm3024_vm0, %v3025_v4 }
 0x8d5   : > { %v1890_v26 = vmul.f32 %v1887_v20, %v3149_v27  ;;  %v1885_v28 = vmul.f32 0.01, %v1876_v24 }
 0x8d6   : > { %v1880_v29 = vpop.f32.mrb[46].mxu1 }
 0x8d7   : > { %v1888_v17 = vmax.f32 %v1876_v24, %v1885_v28  ;;  %v1881_v30 = vadd.f32 %v1880_v29, %v3146_v22  ;;  %2838 = vmatmul.mubr.msk.f32.vlgmr.msra.gmra.mrb[48].mxu0 %vm421_vm2, %v1890_v26  ;;  %v2828_v32 = vpop.f32.mrb[47].mxu1 }
 0x8d8   : > { %2840 = vmatprep.mubr.msk.f32.mxu0 %vm3024_vm0, %v3025_v4  ;;  %2981 = vmatpush3.bf16.msra.mxu0 %v3199_v57 }
 0x8d9   : > { %v1891_v33 = vmul.f32 %v1888_v17, %v3155_v38  ;;  %v1886_v34 = vmul.f32 0.01, %v1881_v30  ;;  %2982 = vmatprep.subr.bf16.mxu0 %v3023_v2 }
 0x8db   : > { %v1889_v27 = vmax.f32 %v1881_v30, %v1886_v34  ;;  %2841 = vmatmul.mubr.msk.f32.gmra.mrb[50].mxu0 %vm421_vm2, %v1891_v33 }
 0x8dc   : > { %2843 = vmatprep.mubr.msk.f32.mxu0 %vm3024_vm0, %v3025_v4  ;;  %2984 = vmatpush3.bf16.msra.mxu0 %v3209_v60 }
 0x8dd   : > { %v1892_v22 = vmul.f32 %v1889_v27, %v3160_v41 }
 0x8df   : > { %2844 = vmatmul.mubr.msk.f32.gmra.mrb[52].mxu0 %vm421_vm2, %v1892_v22 }
 0x8e0   : > { %2869 = vmatprep.mubr.msk.f32.mxu0 %vm3024_vm0, %v3025_v4 }
 0x99e   : > { %v1766_v38 = vpop.f32.mrb[42].mxu0 }
 0x99f   : > { %v1767_v57 = vadd.f32 %v1766_v38, %v3328_v40  ;;  %v2809_v35 = vpop.f32.mrb[43].mxu0 }
 0x9a1   : > { %v1780_v36 = vmul.f32 %v1767_v57, %v3330_v44 }
 0x9a2   : > { %v1771_v37 = vpop.f32.mrb[44].mxu0 }
 0x9a3   : > { %2421 = vst [vmem:[%s3337_s14 + $0x30] sm:$0xff] %v1780_v36  ;;  %v1772_v42 = vadd.f32 %v1771_v37, %v3328_v40  ;;  %v2812_v45 = vpop.f32.mrb[45].mxu0 }
 0x9a5   : > { %v1781_v60 = vmul.f32 %v1772_v42, %v3340_v49 }
 0x9a6   : > { %v1776_v41 = vpop.f32.mrb[46].mxu0 }
 0x9a7   : > { %2422 = vst [vmem:[%s3337_s14 + $0x38] sm:$0xff] %v1781_v60  ;;  %v1777_v3 = vadd.f32 %v1776_v41, %v3328_v40  ;;  %v2815_v47 = vpop.f32.mrb[47].mxu0 }
 0x9a9   : > { %v1782_v48 = vmul.f32 %v1777_v3, %v3345_v53 }
 0x9aa   : > { %v1968_v19 = vpop.f32.mrb[48].mxu0 }
 0x9ab   : > { %2423 = vst [vmem:[%s3337_s14 + $0x40] sm:$0x7f] %v1782_v48  ;;  %v2839_v21 = vpop.f32.mrb[49].mxu0 }
 0x9ae   : > { %v1973_v50 = vpop.f32.mrb[50].mxu0 }
 0x9af   : > { %v2977_v51 = vpack.c.bf16 %v1973_v50, %v1968_v19  ;;  %v2842_v52 = vpop.f32.mrb[51].mxu0 }
 0x9b1   : > { %2978 = vmatpush3.bf16.msra.mxu1 %v2977_v51 }
 0x9b2   : > { %v1978_v54 = vpop.f32.mrb[52].mxu0  ;;  %2850 = vmatprep.subr.mxu1 %v3025_v4 }
 0x9b3   : > { %v2845_v8 = vpop.f32.mrb[53].mxu0 }
 0x9b5   : > { %2851 = vmatpush3.msk.msra.mxu1 %vm521_vm3, %v1978_v54 }
 0x9b6   : > { %2853 = vmatmul.mubr.msk.f32.vlgmr.msra.gmra.mrb[48].mxu1 %vm511_vm4, %v2427_v6  ;;  %2985 = vmatprep.subr.bf16.mxu1 %v3023_v2 }
 0x9b7   : > { %2855 = vmatprep.mubr.msk.f32.mxu1 %vm3024_vm0, %v3025_v4  ;;  %2987 = vmatpush3.bf16.msra.mxu1 %v3261_v39 }
 0x9b8   : > { %2988 = vmatprep.subr.bf16.mxu1 %v3023_v2 }
 0x9ba   : > { %2856 = vmatmul.mubr.msk.f32.gmra.mrb[50].mxu1 %vm511_vm4, %v2428_v55 }
 0x9bb   : > { %2858 = vmatprep.mubr.msk.f32.mxu1 %vm3024_vm0, %v3025_v4  ;;  %2990 = vmatpush3.bf16.msra.mxu1 %v3271_v43 }
 0x9be   : > { %2859 = vmatmul.mubr.msk.f32.gmra.mrb[52].mxu1 %vm511_vm4, %v2429_v58 }
 0x9bf   : > { %2886 = vmatprep.mubr.msk.f32.mxu1 %vm3024_vm0, %v3025_v4 }
 0xa89   : > { %v2060_v59 = vpop.f32.mrb[48].mxu1 }
 0xa8a   : > { %v2061_v61 = vadd.f32 %v2060_v59, %v3218_v63  ;;  %v2854_v62 = vpop.f32.mrb[49].mxu1 }
 0xa8c   : > { %v2074_v39 = vmul.f32 0.01, %v2061_v61 }
 0xa8d   : > { %v2065_v0 = vpop.f32.mrb[50].mxu1 }
 0xa8e   : > { %v2077_v2 = vmax.f32 %v2061_v61, %v2074_v39  ;;  %v2066_v1 = vadd.f32 %v2065_v0, %v3218_v63  ;;  %v2857_v7 = vpop.f32.mrb[51].mxu1 }
 0xa90   : > { %v2080_v9 = vmul.f32 %v2077_v2, %v3222_v15  ;;  %v2075_v10 = vmul.f32 0.01, %v2066_v1 }
 0xa91   : > { %v2070_v12 = vpop.f32.mrb[52].mxu1 }
 0xa92   : > { %v2078_v43 = vmax.f32 %v2066_v1, %v2075_v10  ;;  %v2071_v13 = vadd.f32 %v2070_v12, %v3218_v63  ;;  %2870 = vmatmul.mubr.msk.f32.vlgmr.msra.gmra.mrb[54].mxu0 %vm421_vm2, %v2080_v9  ;;  %v2860_v16 = vpop.f32.mrb[53].mxu1 }
 0xa93   : > { %2872 = vmatprep.mubr.msk.f32.mxu0 %vm3024_vm0, %v3025_v4 }
 0xa94   : > { %v2081_v14 = vmul.f32 %v2078_v43, %v3225_v23  ;;  %v2076_v18 = vmul.f32 0.01, %v2071_v13 }
 0xa96   : > { %v2079_v20 = vmax.f32 %v2071_v13, %v2076_v18  ;;  %2873 = vmatmul.mubr.msk.f32.gmra.mrb[56].mxu0 %vm421_vm2, %v2081_v14 }
 0xa97   : > { %2875 = vmatprep.mubr.msk.f32.mxu0 %vm3024_vm0, %v3025_v4 }
 0xa98   : > { %v2082_v15 = vmul.f32 %v2079_v20, %v3235_v31 }
 0xa9a   : > { %2876 = vmatmul.mubr.msk.f32.gmra.mrb[58].mxu0 %vm421_vm2, %v2082_v15 }
 0xb65   : > { %v2158_v63 = vpop.f32.mrb[54].mxu0 }
 0xb66   : > { %v2159_v24 = vadd.f32 %v2158_v63, %v3280_v46  ;;  %v2871_v25 = vpop.f32.mrb[55].mxu0 }
 0xb68   : > { %v2172_v26 = vmul.f32 0.01, %v2159_v24 }
 0xb69   : > { %v2163_v28 = vpop.f32.mrb[56].mxu0 }
 0xb6a   : > { %v2175_v29 = vmax.f32 %v2159_v24, %v2172_v26  ;;  %v2164_v23 = vadd.f32 %v2163_v28, %v3280_v46  ;;  %v2874_v17 = vpop.f32.mrb[57].mxu0 }
 0xb6c   : > { %v2178_v30 = vmul.f32 %v2175_v29, %v3284_v5  ;;  %v2173_v32 = vmul.f32 0.01, %v2164_v23 }
 0xb6d   : > { %v2168_v33 = vpop.f32.mrb[58].mxu0 }
 0xb6e   : > { %v2176_v34 = vmax.f32 %v2164_v23, %v2173_v32  ;;  %v2169_v27 = vadd.f32 %v2168_v33, %v3280_v46  ;;  %v2877_v31 = vpop.f32.mrb[59].mxu0  ;;  %2887 = vmatmul.mubr.msk.f32.vlgmr.msra.gmra.mrb[54].mxu1 %vm421_vm2, %v2178_v30 }
 0xb6f   : > { %2889 = vmatprep.mubr.msk.f32.mxu1 %vm3024_vm0, %v3025_v4 }
 0xb70   : > { %v2179_v22 = vmul.f32 %v2176_v34, %v3287_v56  ;;  %v2174_v38 = vmul.f32 0.01, %v2169_v27 }
 0xb72   : > { %v2177_v57 = vmax.f32 %v2169_v27, %v2174_v38  ;;  %2890 = vmatmul.mubr.msk.f32.gmra.mrb[56].mxu1 %vm421_vm2, %v2179_v22 }
 0xb73   : > { %2892 = vmatprep.mubr.msk.f32.mxu1 %vm3024_vm0, %v3025_v4 }
 0xb74   : > { %v2180_v5 = vmul.f32 %v2177_v57, %v3298_v11 }
 0xb76   : > { %2893 = vmatmul.mubr.msk.f32.gmra.mrb[58].mxu1 %vm421_vm2, %v2180_v5 }
 0xc41   : > { %v2256_v46 = vpop.f32.mrb[54].mxu1 }
 0xc42   : > { %v2257_v35 = vadd.f32 %v2256_v46, %v3328_v40  ;;  %v2888_v36 = vpop.f32.mrb[55].mxu1 }
 0xc44   : > { %v2270_v37 = vmul.f32 %v2257_v35, %v3330_v44 }
 0xc45   : > { %v2261_v56 = vpop.f32.mrb[56].mxu1 }
 0xc46   : > { %2446 = vst [vmem:[%s3337_s14 + $0x48] sm:$0xff] %v2270_v37  ;;  %v2262_v42 = vadd.f32 %v2261_v56, %v3328_v40  ;;  %v2891_v45 = vpop.f32.mrb[57].mxu1 }
 0xc48   : > { %v2271_v60 = vmul.f32 %v2262_v42, %v3340_v49 }
 0xc49   : > { %v2266_v41 = vpop.f32.mrb[58].mxu1 }
 0xc4a   : > { %2447 = vst [vmem:[%s3337_s14 + $0x50] sm:$0xff] %v2271_v60  ;;  %v2267_v4 = vadd.f32 %v2266_v41, %v3328_v40  ;;  %v2894_v11 = vpop.f32.mrb[59].mxu1 }
 0xc4c   : > { %v2272_v3 = vmul.f32 %v2267_v4, %v3345_v53 }
 0xc4e   : > { %2448 = vst [vmem:[%s3337_s14 + $0x58] sm:$0x7f] %v2272_v3 }
 0xc4f PF: > { %s14_s15 = sadd.s32 1, %s3021_s15  }
 0xc50   : > { %p11_p4 = scmp.ge.s32.totalorder %s14_s15, 4  }
 0xc52   :  { %13 = sbr.rel (!%p11_p4) target bundleno = 1 (0x1), region = 78 }

</bundles_post_ra>
